<compile_context>
chip_gen: v5e
topology: v5e:2x2
jax: 0.10.0
libtpu: 0.0.40
codegen_flags: <defaults>
</compile_context>

<pallas_src>
import functools

import jax
import jax.numpy as jnp
from jax.experimental import pallas as pl
from jax.experimental.pallas import tpu as pltpu


# ---------------------------------------------------------------------------
# Kernel: unrolled add chain over the N input blocks, f32 accumulation.
# ---------------------------------------------------------------------------
def _fusion_sum_kernel(*refs):
    *in_refs, o_ref = refs
    acc = in_refs[0][...].astype(jnp.float32)
    for r in in_refs[1:]:
        acc = acc + r[...].astype(jnp.float32)
    o_ref[...] = acc.astype(o_ref.dtype)


# ---------------------------------------------------------------------------
# Sizing helpers.
# ---------------------------------------------------------------------------
def _round_up(x, m):
    return ((x + m - 1) // m) * m


def _sublane_multiple(dtype):
    # Native sublane packing: (8,128) for 32-bit, (16,128) bf16/f16, (32,128) int8/fp8.
    return max(8, 32 // max(1, jnp.dtype(dtype).itemsize))


@functools.lru_cache(maxsize=1)
def _vmem_budget_bytes():
    """Generation-aware VMEM budget for pipelined blocks (~70% of physical VMEM)."""
    cap = 64 * 1024 * 1024  # conservative default == v7x per-TC VMEM
    try:
        cap = int(pltpu.get_tpu_info().vmem_capacity_bytes)
    except Exception:
        pass
    return int(cap * 0.7)


# Aim for at least this many combined HBM bytes per grid step so the fixed
# ~0.35 us per-step overhead stays small even on v7x's ~3.2 TB/s HBM.
_TARGET_STEP_BYTES = 8 * 1024 * 1024
# Below this total problem size the pallas_call launch overhead dominates;
# fall back to a plain fused XLA add.
_MIN_PALLAS_BYTES = 1 * 1024 * 1024


def _tile_row_cap(n_inputs, width, itemsize, sublane, budget):
    """Max tile rows: hit the per-step byte target, stay inside the VMEM budget."""
    row_bytes = (n_inputs + 1) * width * itemsize          # HBM bytes per tile row
    budget_rows = budget // max(1, 2 * row_bytes)           # double-buffered blocks
    target_rows = -(-_TARGET_STEP_BYTES // max(1, row_bytes))
    cap = min(budget_rows, target_rows)
    return max(sublane, (cap // sublane) * sublane)


def _max_inputs_per_call(width, itemsize, sublane, budget, out_rows):
    """How many feature tensors can be live per pallas_call with decent tiles."""
    decent_rows = min(_round_up(out_rows, sublane), _round_up(128, sublane))
    per_block = 2 * decent_rows * width * itemsize           # double-buffered block
    return max(2, budget // max(1, per_block) - 1)            # -1 for the output block


def _chunked_sum(arrays, sum_fn, max_inputs):
    """Sum a long list in chunks; the running partial is fed into the next call."""
    out = None
    idx = 0
    n = len(arrays)
    while idx < n:
        take = max_inputs if out is None else max_inputs - 1
        group = list(arrays[idx:idx + take])
        idx += take
        if out is not None:
            group = [out] + group
        out = sum_fn(group)
    return out


# ---------------------------------------------------------------------------
# pallas_call wrappers.
# ---------------------------------------------------------------------------
def _pallas_sum_2d(arrays, tile_rows, vmem_limit):
    """Sum of same-shape (rows, width) arrays, 1-D row-tiled grid."""
    rows, width = arrays[0].shape
    dtype = arrays[0].dtype
    n = len(arrays)
    itemsize = jnp.dtype(dtype).itemsize

    block = (tile_rows, width)
    index_map = lambda i: (i, 0)
    cost = pl.CostEstimate(
        flops=(n - 1) * rows * width,
        transcendentals=0,
        bytes_accessed=(n + 1) * rows * width * itemsize,
    )
    return pl.pallas_call(
        _fusion_sum_kernel,
        out_shape=jax.ShapeDtypeStruct((rows, width), dtype),
        grid_spec=pltpu.PrefetchScalarGridSpec(
            num_scalar_prefetch=0,
            grid=(pl.cdiv(rows, tile_rows),),
            in_specs=[pl.BlockSpec(block, index_map) for _ in range(n)],
            out_specs=pl.BlockSpec(block, index_map),
        ),
        compiler_params=pltpu.CompilerParams(
            dimension_semantics=("parallel",),
            vmem_limit_bytes=vmem_limit,
        ),
        cost_estimate=cost,
    )(*arrays)


def _pallas_sum_3d_crop(arrays, lt, tile_l, vmem_limit):
    """Sum of (B, L_i, D) arrays (L_i >= lt), cropped in-kernel to (B, lt, D)."""
    b, _, d = arrays[0].shape
    dtype = arrays[0].dtype
    n = len(arrays)
    itemsize = jnp.dtype(dtype).itemsize

    block = (1, tile_l, d)
    index_map = lambda ib, il: (ib, il, 0)
    cost = pl.CostEstimate(
        flops=(n - 1) * b * lt * d,
        transcendentals=0,
        bytes_accessed=(n + 1) * b * lt * d * itemsize,
    )
    # Last row tile relies on Pallas boundary masking for both the (b, lt, d)
    # output and any input whose padded tile tail crosses its own length.
    return pl.pallas_call(
        _fusion_sum_kernel,
        out_shape=jax.ShapeDtypeStruct((b, lt, d), dtype),
        grid_spec=pltpu.PrefetchScalarGridSpec(
            num_scalar_prefetch=0,
            grid=(b, pl.cdiv(lt, tile_l)),
            in_specs=[pl.BlockSpec(block, index_map) for _ in range(n)],
            out_specs=pl.BlockSpec(block, index_map),
        ),
        compiler_params=pltpu.CompilerParams(
            dimension_semantics=("parallel", "parallel"),
            vmem_limit_bytes=vmem_limit,
        ),
        cost_estimate=cost,
    )(*arrays)


# ---------------------------------------------------------------------------
# Public entry point.
# ---------------------------------------------------------------------------
def fuse_features(multi_res_features, target_length=None):
    """Additive fusion of a list of [B, L, D] feature tensors via Pallas.

    Args:
        multi_res_features: list of jnp arrays, all shaped [B, L, D], same dtype.
        target_length: optional int; output is [B, min(target_length, L), D].

    Returns:
        Fused tensor [B, L, D] (or [B, target_length, D]).
    """
    feats = list(multi_res_features)
    x0 = feats[0]
    b, l, d = x0.shape
    dtype = x0.dtype
    n = len(feats)
    for x in feats[1:]:
        assert x.shape == (b, l, d) and x.dtype == dtype

    # PyTorch-style slicing semantics: a crop beyond L just returns L rows.
    lt = l if target_length is None else min(int(target_length), l)

    itemsize = jnp.dtype(dtype).itemsize
    sublane = _sublane_multiple(dtype)
    budget = _vmem_budget_bytes()
    vmem_limit = int(budget * 1.25)          # budget + headroom, < physical VMEM

    # n == 1: nothing to fuse.
    if n == 1:
        return x0 if lt == l else x0[:, :lt, :]

    # Tiny problems: launch + per-step overhead dominates; let XLA fuse the adds.
    if (n + 1) * b * lt * d * itemsize < _MIN_PALLAS_BYTES:
        acc = feats[0].astype(jnp.float32)
        for x in feats[1:]:
            acc = acc + x.astype(jnp.float32)
        fused = acc.astype(dtype)
        return fused if lt == l else fused[:, :lt, :]

    if lt == l:
        # ---- No-crop path: flatten to a lane-dense 2-D shape (free reshape). --
        total = b * l * d
        if d % 128 == 0:
            width = d
        else:
            width = d                                  # fallback: full-dim lane axis
            for w in (2048, 1024, 512, 256, 128):
                if total % w == 0:
                    width = w
                    break
        rows = total // width
        flat = [x.reshape(rows, width) for x in feats]

        def sum_fn(group):
            cap = _tile_row_cap(len(group), width, itemsize, sublane, budget)
            tile_rows = rows if rows <= cap else cap   # full extent is always legal
            return _pallas_sum_2d(group, tile_rows, vmem_limit)

        max_inputs = _max_inputs_per_call(width, itemsize, sublane, budget, rows)
        fused = _chunked_sum(flat, sum_fn, max_inputs)
        return fused.reshape(b, l, d)

    # ---- Crop path: 3-D grid, crop handled by the output block extent. --------
    def sum_fn(group):
        cap = _tile_row_cap(len(group), d, itemsize, sublane, budget)
        tile_l = min(cap, _round_up(lt, sublane))      # sublane multiple -> legal
        return _pallas_sum_3d_crop(group, lt, tile_l, vmem_limit)

    max_inputs = _max_inputs_per_call(d, itemsize, sublane, budget, lt)
    return _chunked_sum(feats, sum_fn, max_inputs)


if __name__ == "__main__":
    key = jax.random.PRNGKey(0)

    # Shapes large enough to take the Pallas path (see _MIN_PALLAS_BYTES),
    # but still small/fast for a smoke test.
    B, L, D = 2, 256, 256
    N_FEATURES = 3
    keys = jax.random.split(key, N_FEATURES + 1)
    feats = [jax.random.normal(k, (B, L, D), dtype=jnp.float32)
             for k in keys[:N_FEATURES]]
    ref_full = feats[0] + feats[1] + feats[2]

    # 1) No-crop path (flattened lane-dense 2-D kernel).
    out_full = jax.block_until_ready(fuse_features(feats))
    assert out_full.shape == (B, L, D)
    assert jnp.allclose(out_full, ref_full, atol=1e-5, rtol=1e-5)

    # 2) Crop path: in-kernel crop, non-8-aligned target length -> masked tail tile.
    TARGET_LEN = 100
    out_crop = jax.block_until_ready(fuse_features(feats, target_length=TARGET_LEN))
    assert out_crop.shape == (B, TARGET_LEN, D)
    assert jnp.allclose(out_crop, ref_full[:, :TARGET_LEN, :], atol=1e-5, rtol=1e-5)

    # 3) Non-lane-aligned hidden dim (flattened to a 128-multiple lane width).
    D2, L2 = 96, 512
    keys2 = jax.random.split(keys[-1], 2)
    feats2 = [jax.random.normal(k, (B, L2, D2), dtype=jnp.float32) for k in keys2]
    out2 = jax.block_until_ready(fuse_features(feats2))
    assert out2.shape == (B, L2, D2)
    assert jnp.allclose(out2, feats2[0] + feats2[1], atol=1e-5, rtol=1e-5)

    # 4) Tiny input -> plain XLA fallback path (with crop).
    small_keys = jax.random.split(keys[0], 2)
    small = [jax.random.normal(k, (2, 16, 128), dtype=jnp.float32) for k in small_keys]
    out_small = jax.block_until_ready(fuse_features(small, target_length=8))
    assert out_small.shape == (2, 8, 128)
    assert jnp.allclose(out_small, (small[0] + small[1])[:, :8, :],
                        atol=1e-5, rtol=1e-5)

    print("KERNEL_OK")
</pallas_src>

<mosaic_0001>
module attributes {stable_mosaic.version = 11 : i64} {
  func.func @_fusion_sum_kernel(%arg0: i32, %arg1: memref<512x256xf32, #tpu.memory_space<vmem>>, %arg2: memref<512x256xf32, #tpu.memory_space<vmem>>, %arg3: memref<512x256xf32, #tpu.memory_space<vmem>>, %arg4: memref<512x256xf32, #tpu.memory_space<vmem>>) attributes {dimension_semantics = [#tpu.dimension_semantics<parallel>], iteration_bounds = array<i64: 1>, scalar_prefetch = 0 : i64, scratch_operands = 0 : i64, tpu.core_type = #tpu.core_type<tc>, window_params = [{transform_indices = @transform_0, window_bounds = array<i64: 512, 256>}, {transform_indices = @transform_1, window_bounds = array<i64: 512, 256>}, {transform_indices = @transform_2, window_bounds = array<i64: 512, 256>}, {transform_indices = @transform_3, window_bounds = array<i64: 512, 256>}]} {
    %c0 = arith.constant 0 : index
    %c0_0 = arith.constant 0 : index
    %0 = vector.load %arg1[%c0, %c0_0] : memref<512x256xf32, #tpu.memory_space<vmem>>, vector<512x256xf32>
    %c0_1 = arith.constant 0 : index
    %c0_2 = arith.constant 0 : index
    %1 = vector.load %arg2[%c0_1, %c0_2] : memref<512x256xf32, #tpu.memory_space<vmem>>, vector<512x256xf32>
    %2 = arith.addf %0, %1 : vector<512x256xf32>
    %c0_3 = arith.constant 0 : index
    %c0_4 = arith.constant 0 : index
    %3 = vector.load %arg3[%c0_3, %c0_4] : memref<512x256xf32, #tpu.memory_space<vmem>>, vector<512x256xf32>
    %4 = arith.addf %2, %3 : vector<512x256xf32>
    %c0_5 = arith.constant 0 : index
    %c0_6 = arith.constant 0 : index
    %5 = vector.load %arg4[%c0_5, %c0_6] : memref<512x256xf32, #tpu.memory_space<vmem>>, vector<512x256xf32>
    tpu.vector_store %arg4[%c0_5, %c0_6], %4 {strides = array<i32>} : memref<512x256xf32, #tpu.memory_space<vmem>>, vector<512x256xf32>,
    return
  }
  func.func @transform_0(%arg0: i32) -> (i32, i32) {
    %c0_i32 = arith.constant 0 : i32
    %c0_i32_0 = arith.constant 0 : i32
    return %arg0, %c0_i32 : i32, i32
  }
  func.func @transform_1(%arg0: i32) -> (i32, i32) {
    %c0_i32 = arith.constant 0 : i32
    %c0_i32_0 = arith.constant 0 : i32
    return %arg0, %c0_i32 : i32, i32
  }
  func.func @transform_2(%arg0: i32) -> (i32, i32) {
    %c0_i32 = arith.constant 0 : i32
    %c0_i32_0 = arith.constant 0 : i32
    return %arg0, %c0_i32 : i32, i32
  }
  func.func @transform_3(%arg0: i32) -> (i32, i32) {
    %c0_i32 = arith.constant 0 : i32
    %c0_i32_0 = arith.constant 0 : i32
    return %arg0, %c0_i32 : i32, i32
  }
}

</mosaic_0001>

<bundles_post_ra>
// kernel: tpu_custom_call.1
= control target key start
LH: loop header
LB: loop body
LE: loop exit
PB: predicated region body
PF: predicated region fallthrough
CT: control target
= control target key end

     0   :  { %8 = vsyncpa [#allocation3], 0  ;;  %s1008_s0 = inlined_call_operand.hbm [shape: f32[512,256], index: 0, kind: input, shape index: {}]   ;;  %s1009_s1 = inlined_call_operand.hbm [shape: f32[512,256], index: 1, kind: input, shape index: {}]   ;;  %s1010_s2 = inlined_call_operand.hbm [shape: f32[512,256], index: 2, kind: input, shape index: {}]   ;;  %s1011_s3 = inlined_call_operand.hbm [shape: f32[512,256], index: 3, kind: output, shape index: {}]  }
   0x1   :  { %9 = vsyncpa [#allocation6], 0 }
   0x2   :  { %10 = vsyncpa [#allocation4], 0  ;;  %s28_s14 = sshll.u32 %s1009_s1, 4  ;;  %s958_s15 = smov [#allocation5]   ;;  %s29_s14 = int_to_ptr.hbm [resolvable:$true] %s28_s14 }
   0x3   :  { %s30_s16 = sshll.u32 %s958_s15, 4  ;;  %s15_s19 = sshll.u32 %s1008_s0, 4  ;;  %s31_s16 = int_to_ptr.vmem [resolvable:$true] %s30_s16  ;;  %s16_s19 = int_to_ptr.hbm [resolvable:$true] %s15_s19 }
   0x4   :  { %s959_s20 = smov 256   ;;  %s960_s21 = smov 16  }
   0x5   :  { %36 = dma.hbm_to_vmem [thread:$0]  %s29_s14, 16384, %s31_s16, [#allocation6], %s959_s20, %s959_s20, %s960_s21  }
   0x6   :  { %s961_s22 = smov [#allocation2]   ;;  %s41_s1 = sshll.u32 %s1010_s2, 4  ;;  %s42_s1 = int_to_ptr.hbm [resolvable:$true] %s41_s1 }
   0x7   :  { %s17_s23 = sshll.u32 %s961_s22, 4  ;;  %s962_s0 = smov [#allocation7]   ;;  %s18_s23 = int_to_ptr.vmem [resolvable:$true] %s17_s23 }
   0x8   :  { %23 = dma.hbm_to_vmem [thread:$0]  %s16_s19, 16384, %s18_s23, [#allocation3], %s959_s20, %s959_s20, %s960_s21  }
   0x9   :  { %s43_s26 = sshll.u32 %s962_s0, 4  ;;  %s44_s26 = int_to_ptr.vmem [resolvable:$true] %s43_s26 }
   0xa   :  { %49 = dma.hbm_to_vmem [thread:$0]  %s42_s1, 16384, %s44_s26, [#allocation6], %s959_s20, %s959_s20, %s960_s21  }
   0xb   :  { %952 = dma.done.wait [#allocation3], 16384  }
   0xc   :  { %953 = vsyncadd [#allocation3], 4294950912 }
   0xd   :  { %954 = dma.done.wait [#allocation6], 32768  }
   0xe   :  { %955 = vsyncadd [#allocation6], 4294934528  ;;  %v62_v0 = vld [vmem:[#allocation2] sm:$0xff]  ;;  %v63_v4 = vld [vmem:[#allocation2 + $0x8] sm:$0xff]  ;;  %s963_s2 = smov [#allocation8]   ;;  %s836_s30 = sshll.u32 %s1011_s3, 4  ;;  %s837_s30 = int_to_ptr.hbm [resolvable:$true] %s836_s30 }
   0xf   :  { %v190_v1 = vld [vmem:[#allocation5] sm:$0xff]  ;;  %v191_v5 = vld [vmem:[#allocation5 + $0x8] sm:$0xff]  ;;  %v64_v8 = vld [vmem:[#allocation2 + $0x10] sm:$0xff]  ;;  %s834_s27 = sshll.u32 %s963_s2, 4  ;;  %s835_s27 = int_to_ptr.vmem [resolvable:$true] %s834_s27 }
  0x10   :  { %v446_v2 = vld [vmem:[#allocation7] sm:$0xff]  ;;  %v318_v3 = vadd.f32 %v190_v1, %v62_v0  ;;  %v447_v6 = vld [vmem:[#allocation7 + $0x8] sm:$0xff]  ;;  %v319_v7 = vadd.f32 %v191_v5, %v63_v4  ;;  %v192_v9 = vld [vmem:[#allocation5 + $0x10] sm:$0xff] }
  0x11   :  { %v448_v10 = vld [vmem:[#allocation7 + $0x10] sm:$0xff]  ;;  %v320_v12 = vadd.f32 %v192_v9, %v64_v8  ;;  %v65_v13 = vld [vmem:[#allocation2 + $0x18] sm:$0xff]  ;;  %v66_v18 = vld [vmem:[#allocation2 + $0x20] sm:$0xff] }
  0x12   :  { %v574_v11 = vadd.f32 %v446_v2, %v318_v3  ;;  %v193_v14 = vld [vmem:[#allocation5 + $0x18] sm:$0xff]  ;;  %v575_v16 = vadd.f32 %v447_v6, %v319_v7  ;;  %v194_v19 = vld [vmem:[#allocation5 + $0x20] sm:$0xff]  ;;  %v67_v23 = vld [vmem:[#allocation2 + $0x28] sm:$0xff] }
  0x13   :  { %v449_v15 = vld [vmem:[#allocation7 + $0x18] sm:$0xff]  ;;  %v321_v17 = vadd.f32 %v193_v14, %v65_v13  ;;  %v450_v20 = vld [vmem:[#allocation7 + $0x20] sm:$0xff]  ;;  %v576_v21 = vadd.f32 %v448_v10, %v320_v12  ;;  %v322_v22 = vadd.f32 %v194_v19, %v66_v18  ;;  %v195_v24 = vld [vmem:[#allocation5 + $0x28] sm:$0xff] }
  0x14   :  { %702 = vst [vmem:[#allocation8] sm:$0xff] %v574_v11  ;;  %v451_v25 = vld [vmem:[#allocation7 + $0x28] sm:$0xff]  ;;  %v323_v27 = vadd.f32 %v195_v24, %v67_v23  ;;  %v68_v28 = vld [vmem:[#allocation2 + $0x30] sm:$0xff]  ;;  %v69_v33 = vld [vmem:[#allocation2 + $0x38] sm:$0xff] }
  0x15   :  { %703 = vst [vmem:[#allocation8 + $0x8] sm:$0xff] %v575_v16  ;;  %v577_v26 = vadd.f32 %v449_v15, %v321_v17  ;;  %v196_v29 = vld [vmem:[#allocation5 + $0x30] sm:$0xff]  ;;  %v578_v31 = vadd.f32 %v450_v20, %v322_v22  ;;  %v197_v34 = vld [vmem:[#allocation5 + $0x38] sm:$0xff]  ;;  %v70_v38 = vld [vmem:[#allocation2 + $0x40] sm:$0xff] }
  0x16   :  { %v452_v30 = vld [vmem:[#allocation7 + $0x30] sm:$0xff]  ;;  %704 = vst [vmem:[#allocation8 + $0x10] sm:$0xff] %v576_v21  ;;  %v324_v32 = vadd.f32 %v196_v29, %v68_v28  ;;  %v453_v35 = vld [vmem:[#allocation7 + $0x38] sm:$0xff]  ;;  %v579_v36 = vadd.f32 %v451_v25, %v323_v27  ;;  %v325_v37 = vadd.f32 %v197_v34, %v69_v33  ;;  %v198_v39 = vld [vmem:[#allocation5 + $0x40] sm:$0xff] }
  0x17   :  { %705 = vst [vmem:[#allocation8 + $0x18] sm:$0xff] %v577_v26  ;;  %v454_v40 = vld [vmem:[#allocation7 + $0x40] sm:$0xff]  ;;  %v326_v42 = vadd.f32 %v198_v39, %v70_v38  ;;  %v71_v43 = vld [vmem:[#allocation2 + $0x48] sm:$0xff]  ;;  %v72_v48 = vld [vmem:[#allocation2 + $0x50] sm:$0xff] }
  0x18   :  { %706 = vst [vmem:[#allocation8 + $0x20] sm:$0xff] %v578_v31  ;;  %v580_v41 = vadd.f32 %v452_v30, %v324_v32  ;;  %v199_v44 = vld [vmem:[#allocation5 + $0x48] sm:$0xff]  ;;  %v581_v46 = vadd.f32 %v453_v35, %v325_v37  ;;  %v200_v49 = vld [vmem:[#allocation5 + $0x50] sm:$0xff]  ;;  %v73_v53 = vld [vmem:[#allocation2 + $0x58] sm:$0xff] }
  0x19   :  { %v455_v45 = vld [vmem:[#allocation7 + $0x48] sm:$0xff]  ;;  %707 = vst [vmem:[#allocation8 + $0x28] sm:$0xff] %v579_v36  ;;  %v327_v47 = vadd.f32 %v199_v44, %v71_v43  ;;  %v456_v50 = vld [vmem:[#allocation7 + $0x50] sm:$0xff]  ;;  %v582_v51 = vadd.f32 %v454_v40, %v326_v42  ;;  %v328_v52 = vadd.f32 %v200_v49, %v72_v48  ;;  %v201_v54 = vld [vmem:[#allocation5 + $0x58] sm:$0xff] }
  0x1a   :  { %708 = vst [vmem:[#allocation8 + $0x30] sm:$0xff] %v580_v41  ;;  %v457_v55 = vld [vmem:[#allocation7 + $0x58] sm:$0xff]  ;;  %v329_v57 = vadd.f32 %v201_v54, %v73_v53  ;;  %v74_v58 = vld [vmem:[#allocation2 + $0x60] sm:$0xff]  ;;  %v75_v63 = vld [vmem:[#allocation2 + $0x68] sm:$0xff] }
  0x1b   :  { %709 = vst [vmem:[#allocation8 + $0x38] sm:$0xff] %v581_v46  ;;  %v583_v56 = vadd.f32 %v455_v45, %v327_v47  ;;  %v202_v59 = vld [vmem:[#allocation5 + $0x60] sm:$0xff]  ;;  %v584_v61 = vadd.f32 %v456_v50, %v328_v52  ;;  %v203_v0 = vld [vmem:[#allocation5 + $0x68] sm:$0xff]  ;;  %v76_v4 = vld [vmem:[#allocation2 + $0x70] sm:$0xff] }
  0x1c   :  { %v458_v60 = vld [vmem:[#allocation7 + $0x60] sm:$0xff]  ;;  %710 = vst [vmem:[#allocation8 + $0x40] sm:$0xff] %v582_v51  ;;  %v330_v62 = vadd.f32 %v202_v59, %v74_v58  ;;  %v459_v1 = vld [vmem:[#allocation7 + $0x68] sm:$0xff]  ;;  %v585_v2 = vadd.f32 %v457_v55, %v329_v57  ;;  %v331_v3 = vadd.f32 %v203_v0, %v75_v63  ;;  %v204_v5 = vld [vmem:[#allocation5 + $0x70] sm:$0xff] }
  0x1d   :  { %711 = vst [vmem:[#allocation8 + $0x48] sm:$0xff] %v583_v56  ;;  %v460_v6 = vld [vmem:[#allocation7 + $0x70] sm:$0xff]  ;;  %v332_v8 = vadd.f32 %v204_v5, %v76_v4  ;;  %v77_v9 = vld [vmem:[#allocation2 + $0x78] sm:$0xff]  ;;  %v78_v14 = vld [vmem:[#allocation2 + $0x80] sm:$0xff] }
  0x1e   :  { %712 = vst [vmem:[#allocation8 + $0x50] sm:$0xff] %v584_v61  ;;  %v586_v7 = vadd.f32 %v458_v60, %v330_v62  ;;  %v205_v10 = vld [vmem:[#allocation5 + $0x78] sm:$0xff]  ;;  %v587_v12 = vadd.f32 %v459_v1, %v331_v3  ;;  %v206_v15 = vld [vmem:[#allocation5 + $0x80] sm:$0xff]  ;;  %v79_v19 = vld [vmem:[#allocation2 + $0x88] sm:$0xff] }
  0x1f   :  { %v461_v11 = vld [vmem:[#allocation7 + $0x78] sm:$0xff]  ;;  %713 = vst [vmem:[#allocation8 + $0x58] sm:$0xff] %v585_v2  ;;  %v333_v13 = vadd.f32 %v205_v10, %v77_v9  ;;  %v462_v16 = vld [vmem:[#allocation7 + $0x80] sm:$0xff]  ;;  %v588_v17 = vadd.f32 %v460_v6, %v332_v8  ;;  %v334_v18 = vadd.f32 %v206_v15, %v78_v14  ;;  %v207_v20 = vld [vmem:[#allocation5 + $0x88] sm:$0xff] }
  0x20   :  { %714 = vst [vmem:[#allocation8 + $0x60] sm:$0xff] %v586_v7  ;;  %v463_v21 = vld [vmem:[#allocation7 + $0x88] sm:$0xff]  ;;  %v335_v23 = vadd.f32 %v207_v20, %v79_v19  ;;  %v80_v24 = vld [vmem:[#allocation2 + $0x90] sm:$0xff]  ;;  %v81_v29 = vld [vmem:[#allocation2 + $0x98] sm:$0xff] }
  0x21   :  { %715 = vst [vmem:[#allocation8 + $0x68] sm:$0xff] %v587_v12  ;;  %v589_v22 = vadd.f32 %v461_v11, %v333_v13  ;;  %v208_v25 = vld [vmem:[#allocation5 + $0x90] sm:$0xff]  ;;  %v590_v27 = vadd.f32 %v462_v16, %v334_v18  ;;  %v209_v30 = vld [vmem:[#allocation5 + $0x98] sm:$0xff]  ;;  %v82_v34 = vld [vmem:[#allocation2 + $0xa0] sm:$0xff] }
  0x22   :  { %v464_v26 = vld [vmem:[#allocation7 + $0x90] sm:$0xff]  ;;  %716 = vst [vmem:[#allocation8 + $0x70] sm:$0xff] %v588_v17  ;;  %v336_v28 = vadd.f32 %v208_v25, %v80_v24  ;;  %v465_v31 = vld [vmem:[#allocation7 + $0x98] sm:$0xff]  ;;  %v591_v32 = vadd.f32 %v463_v21, %v335_v23  ;;  %v337_v33 = vadd.f32 %v209_v30, %v81_v29  ;;  %v210_v35 = vld [vmem:[#allocation5 + $0xa0] sm:$0xff] }
  0x23   :  { %717 = vst [vmem:[#allocation8 + $0x78] sm:$0xff] %v589_v22  ;;  %v466_v36 = vld [vmem:[#allocation7 + $0xa0] sm:$0xff]  ;;  %v338_v38 = vadd.f32 %v210_v35, %v82_v34  ;;  %v83_v39 = vld [vmem:[#allocation2 + $0xa8] sm:$0xff]  ;;  %v84_v44 = vld [vmem:[#allocation2 + $0xb0] sm:$0xff] }
  0x24   :  { %718 = vst [vmem:[#allocation8 + $0x80] sm:$0xff] %v590_v27  ;;  %v592_v37 = vadd.f32 %v464_v26, %v336_v28  ;;  %v211_v40 = vld [vmem:[#allocation5 + $0xa8] sm:$0xff]  ;;  %v593_v42 = vadd.f32 %v465_v31, %v337_v33  ;;  %v212_v45 = vld [vmem:[#allocation5 + $0xb0] sm:$0xff]  ;;  %v85_v49 = vld [vmem:[#allocation2 + $0xb8] sm:$0xff] }
  0x25   :  { %v467_v41 = vld [vmem:[#allocation7 + $0xa8] sm:$0xff]  ;;  %719 = vst [vmem:[#allocation8 + $0x88] sm:$0xff] %v591_v32  ;;  %v339_v43 = vadd.f32 %v211_v40, %v83_v39  ;;  %v468_v46 = vld [vmem:[#allocation7 + $0xb0] sm:$0xff]  ;;  %v594_v47 = vadd.f32 %v466_v36, %v338_v38  ;;  %v340_v48 = vadd.f32 %v212_v45, %v84_v44  ;;  %v213_v50 = vld [vmem:[#allocation5 + $0xb8] sm:$0xff] }
  0x26   :  { %720 = vst [vmem:[#allocation8 + $0x90] sm:$0xff] %v592_v37  ;;  %v469_v51 = vld [vmem:[#allocation7 + $0xb8] sm:$0xff]  ;;  %v341_v53 = vadd.f32 %v213_v50, %v85_v49  ;;  %v86_v54 = vld [vmem:[#allocation2 + $0xc0] sm:$0xff]  ;;  %v87_v59 = vld [vmem:[#allocation2 + $0xc8] sm:$0xff] }
  0x27   :  { %721 = vst [vmem:[#allocation8 + $0x98] sm:$0xff] %v593_v42  ;;  %v595_v52 = vadd.f32 %v467_v41, %v339_v43  ;;  %v214_v55 = vld [vmem:[#allocation5 + $0xc0] sm:$0xff]  ;;  %v596_v57 = vadd.f32 %v468_v46, %v340_v48  ;;  %v215_v60 = vld [vmem:[#allocation5 + $0xc8] sm:$0xff]  ;;  %v88_v0 = vld [vmem:[#allocation2 + $0xd0] sm:$0xff] }
  0x28   :  { %v470_v56 = vld [vmem:[#allocation7 + $0xc0] sm:$0xff]  ;;  %722 = vst [vmem:[#allocation8 + $0xa0] sm:$0xff] %v594_v47  ;;  %v342_v58 = vadd.f32 %v214_v55, %v86_v54  ;;  %v471_v61 = vld [vmem:[#allocation7 + $0xc8] sm:$0xff]  ;;  %v597_v62 = vadd.f32 %v469_v51, %v341_v53  ;;  %v343_v63 = vadd.f32 %v215_v60, %v87_v59  ;;  %v216_v1 = vld [vmem:[#allocation5 + $0xd0] sm:$0xff] }
  0x29   :  { %723 = vst [vmem:[#allocation8 + $0xa8] sm:$0xff] %v595_v52  ;;  %v472_v2 = vld [vmem:[#allocation7 + $0xd0] sm:$0xff]  ;;  %v344_v4 = vadd.f32 %v216_v1, %v88_v0  ;;  %v89_v5 = vld [vmem:[#allocation2 + $0xd8] sm:$0xff]  ;;  %v90_v10 = vld [vmem:[#allocation2 + $0xe0] sm:$0xff] }
  0x2a   :  { %724 = vst [vmem:[#allocation8 + $0xb0] sm:$0xff] %v596_v57  ;;  %v598_v3 = vadd.f32 %v470_v56, %v342_v58  ;;  %v217_v6 = vld [vmem:[#allocation5 + $0xd8] sm:$0xff]  ;;  %v599_v8 = vadd.f32 %v471_v61, %v343_v63  ;;  %v218_v11 = vld [vmem:[#allocation5 + $0xe0] sm:$0xff]  ;;  %v91_v15 = vld [vmem:[#allocation2 + $0xe8] sm:$0xff] }
  0x2b   :  { %v473_v7 = vld [vmem:[#allocation7 + $0xd8] sm:$0xff]  ;;  %725 = vst [vmem:[#allocation8 + $0xb8] sm:$0xff] %v597_v62  ;;  %v345_v9 = vadd.f32 %v217_v6, %v89_v5  ;;  %v474_v12 = vld [vmem:[#allocation7 + $0xe0] sm:$0xff]  ;;  %v600_v13 = vadd.f32 %v472_v2, %v344_v4  ;;  %v346_v14 = vadd.f32 %v218_v11, %v90_v10  ;;  %v219_v16 = vld [vmem:[#allocation5 + $0xe8] sm:$0xff] }
  0x2c   :  { %726 = vst [vmem:[#allocation8 + $0xc0] sm:$0xff] %v598_v3  ;;  %v475_v17 = vld [vmem:[#allocation7 + $0xe8] sm:$0xff]  ;;  %v347_v19 = vadd.f32 %v219_v16, %v91_v15  ;;  %v92_v20 = vld [vmem:[#allocation2 + $0xf0] sm:$0xff]  ;;  %v93_v25 = vld [vmem:[#allocation2 + $0xf8] sm:$0xff] }
  0x2d   :  { %727 = vst [vmem:[#allocation8 + $0xc8] sm:$0xff] %v599_v8  ;;  %v601_v18 = vadd.f32 %v473_v7, %v345_v9  ;;  %v220_v21 = vld [vmem:[#allocation5 + $0xf0] sm:$0xff]  ;;  %v602_v23 = vadd.f32 %v474_v12, %v346_v14  ;;  %v221_v26 = vld [vmem:[#allocation5 + $0xf8] sm:$0xff]  ;;  %v94_v30 = vld [vmem:[#allocation2 + $0x100] sm:$0xff] }
  0x2e   :  { %v476_v22 = vld [vmem:[#allocation7 + $0xf0] sm:$0xff]  ;;  %728 = vst [vmem:[#allocation8 + $0xd0] sm:$0xff] %v600_v13  ;;  %v348_v24 = vadd.f32 %v220_v21, %v92_v20  ;;  %v477_v27 = vld [vmem:[#allocation7 + $0xf8] sm:$0xff]  ;;  %v603_v28 = vadd.f32 %v475_v17, %v347_v19  ;;  %v349_v29 = vadd.f32 %v221_v26, %v93_v25  ;;  %v222_v31 = vld [vmem:[#allocation5 + $0x100] sm:$0xff] }
  0x2f   :  { %729 = vst [vmem:[#allocation8 + $0xd8] sm:$0xff] %v601_v18  ;;  %v478_v32 = vld [vmem:[#allocation7 + $0x100] sm:$0xff]  ;;  %v350_v34 = vadd.f32 %v222_v31, %v94_v30  ;;  %v95_v35 = vld [vmem:[#allocation2 + $0x108] sm:$0xff]  ;;  %v96_v40 = vld [vmem:[#allocation2 + $0x110] sm:$0xff] }
  0x30   :  { %730 = vst [vmem:[#allocation8 + $0xe0] sm:$0xff] %v602_v23  ;;  %v604_v33 = vadd.f32 %v476_v22, %v348_v24  ;;  %v223_v36 = vld [vmem:[#allocation5 + $0x108] sm:$0xff]  ;;  %v605_v38 = vadd.f32 %v477_v27, %v349_v29  ;;  %v224_v41 = vld [vmem:[#allocation5 + $0x110] sm:$0xff]  ;;  %v97_v45 = vld [vmem:[#allocation2 + $0x118] sm:$0xff] }
  0x31   :  { %v479_v37 = vld [vmem:[#allocation7 + $0x108] sm:$0xff]  ;;  %731 = vst [vmem:[#allocation8 + $0xe8] sm:$0xff] %v603_v28  ;;  %v351_v39 = vadd.f32 %v223_v36, %v95_v35  ;;  %v480_v42 = vld [vmem:[#allocation7 + $0x110] sm:$0xff]  ;;  %v606_v43 = vadd.f32 %v478_v32, %v350_v34  ;;  %v352_v44 = vadd.f32 %v224_v41, %v96_v40  ;;  %v225_v46 = vld [vmem:[#allocation5 + $0x118] sm:$0xff] }
  0x32   :  { %732 = vst [vmem:[#allocation8 + $0xf0] sm:$0xff] %v604_v33  ;;  %v481_v47 = vld [vmem:[#allocation7 + $0x118] sm:$0xff]  ;;  %v353_v49 = vadd.f32 %v225_v46, %v97_v45  ;;  %v98_v50 = vld [vmem:[#allocation2 + $0x120] sm:$0xff]  ;;  %v99_v55 = vld [vmem:[#allocation2 + $0x128] sm:$0xff] }
  0x33   :  { %733 = vst [vmem:[#allocation8 + $0xf8] sm:$0xff] %v605_v38  ;;  %v607_v48 = vadd.f32 %v479_v37, %v351_v39  ;;  %v226_v51 = vld [vmem:[#allocation5 + $0x120] sm:$0xff]  ;;  %v608_v53 = vadd.f32 %v480_v42, %v352_v44  ;;  %v227_v56 = vld [vmem:[#allocation5 + $0x128] sm:$0xff]  ;;  %v100_v60 = vld [vmem:[#allocation2 + $0x130] sm:$0xff] }
  0x34   :  { %v482_v52 = vld [vmem:[#allocation7 + $0x120] sm:$0xff]  ;;  %734 = vst [vmem:[#allocation8 + $0x100] sm:$0xff] %v606_v43  ;;  %v354_v54 = vadd.f32 %v226_v51, %v98_v50  ;;  %v483_v57 = vld [vmem:[#allocation7 + $0x128] sm:$0xff]  ;;  %v609_v58 = vadd.f32 %v481_v47, %v353_v49  ;;  %v355_v59 = vadd.f32 %v227_v56, %v99_v55  ;;  %v228_v61 = vld [vmem:[#allocation5 + $0x130] sm:$0xff] }
  0x35   :  { %735 = vst [vmem:[#allocation8 + $0x108] sm:$0xff] %v607_v48  ;;  %v484_v62 = vld [vmem:[#allocation7 + $0x130] sm:$0xff]  ;;  %v356_v0 = vadd.f32 %v228_v61, %v100_v60  ;;  %v101_v1 = vld [vmem:[#allocation2 + $0x138] sm:$0xff]  ;;  %v102_v6 = vld [vmem:[#allocation2 + $0x140] sm:$0xff] }
  0x36   :  { %736 = vst [vmem:[#allocation8 + $0x110] sm:$0xff] %v608_v53  ;;  %v610_v63 = vadd.f32 %v482_v52, %v354_v54  ;;  %v229_v2 = vld [vmem:[#allocation5 + $0x138] sm:$0xff]  ;;  %v611_v4 = vadd.f32 %v483_v57, %v355_v59  ;;  %v230_v7 = vld [vmem:[#allocation5 + $0x140] sm:$0xff]  ;;  %v103_v11 = vld [vmem:[#allocation2 + $0x148] sm:$0xff] }
  0x37   :  { %v485_v3 = vld [vmem:[#allocation7 + $0x138] sm:$0xff]  ;;  %737 = vst [vmem:[#allocation8 + $0x118] sm:$0xff] %v609_v58  ;;  %v357_v5 = vadd.f32 %v229_v2, %v101_v1  ;;  %v486_v8 = vld [vmem:[#allocation7 + $0x140] sm:$0xff]  ;;  %v612_v9 = vadd.f32 %v484_v62, %v356_v0  ;;  %v358_v10 = vadd.f32 %v230_v7, %v102_v6  ;;  %v231_v12 = vld [vmem:[#allocation5 + $0x148] sm:$0xff] }
  0x38   :  { %738 = vst [vmem:[#allocation8 + $0x120] sm:$0xff] %v610_v63  ;;  %v487_v13 = vld [vmem:[#allocation7 + $0x148] sm:$0xff]  ;;  %v359_v15 = vadd.f32 %v231_v12, %v103_v11  ;;  %v104_v16 = vld [vmem:[#allocation2 + $0x150] sm:$0xff]  ;;  %v105_v21 = vld [vmem:[#allocation2 + $0x158] sm:$0xff] }
  0x39   :  { %739 = vst [vmem:[#allocation8 + $0x128] sm:$0xff] %v611_v4  ;;  %v613_v14 = vadd.f32 %v485_v3, %v357_v5  ;;  %v232_v17 = vld [vmem:[#allocation5 + $0x150] sm:$0xff]  ;;  %v614_v19 = vadd.f32 %v486_v8, %v358_v10  ;;  %v233_v22 = vld [vmem:[#allocation5 + $0x158] sm:$0xff]  ;;  %v106_v26 = vld [vmem:[#allocation2 + $0x160] sm:$0xff] }
  0x3a   :  { %v488_v18 = vld [vmem:[#allocation7 + $0x150] sm:$0xff]  ;;  %740 = vst [vmem:[#allocation8 + $0x130] sm:$0xff] %v612_v9  ;;  %v360_v20 = vadd.f32 %v232_v17, %v104_v16  ;;  %v489_v23 = vld [vmem:[#allocation7 + $0x158] sm:$0xff]  ;;  %v615_v24 = vadd.f32 %v487_v13, %v359_v15  ;;  %v361_v25 = vadd.f32 %v233_v22, %v105_v21  ;;  %v234_v27 = vld [vmem:[#allocation5 + $0x160] sm:$0xff] }
  0x3b   :  { %741 = vst [vmem:[#allocation8 + $0x138] sm:$0xff] %v613_v14  ;;  %v490_v28 = vld [vmem:[#allocation7 + $0x160] sm:$0xff]  ;;  %v362_v30 = vadd.f32 %v234_v27, %v106_v26  ;;  %v107_v31 = vld [vmem:[#allocation2 + $0x168] sm:$0xff]  ;;  %v108_v36 = vld [vmem:[#allocation2 + $0x170] sm:$0xff] }
  0x3c   :  { %742 = vst [vmem:[#allocation8 + $0x140] sm:$0xff] %v614_v19  ;;  %v616_v29 = vadd.f32 %v488_v18, %v360_v20  ;;  %v235_v32 = vld [vmem:[#allocation5 + $0x168] sm:$0xff]  ;;  %v617_v34 = vadd.f32 %v489_v23, %v361_v25  ;;  %v236_v37 = vld [vmem:[#allocation5 + $0x170] sm:$0xff]  ;;  %v109_v41 = vld [vmem:[#allocation2 + $0x178] sm:$0xff] }
  0x3d   :  { %v491_v33 = vld [vmem:[#allocation7 + $0x168] sm:$0xff]  ;;  %743 = vst [vmem:[#allocation8 + $0x148] sm:$0xff] %v615_v24  ;;  %v363_v35 = vadd.f32 %v235_v32, %v107_v31  ;;  %v492_v38 = vld [vmem:[#allocation7 + $0x170] sm:$0xff]  ;;  %v618_v39 = vadd.f32 %v490_v28, %v362_v30  ;;  %v364_v40 = vadd.f32 %v236_v37, %v108_v36  ;;  %v237_v42 = vld [vmem:[#allocation5 + $0x178] sm:$0xff] }
  0x3e   :  { %744 = vst [vmem:[#allocation8 + $0x150] sm:$0xff] %v616_v29  ;;  %v493_v43 = vld [vmem:[#allocation7 + $0x178] sm:$0xff]  ;;  %v365_v45 = vadd.f32 %v237_v42, %v109_v41  ;;  %v110_v46 = vld [vmem:[#allocation2 + $0x180] sm:$0xff]  ;;  %v111_v51 = vld [vmem:[#allocation2 + $0x188] sm:$0xff] }
  0x3f   :  { %745 = vst [vmem:[#allocation8 + $0x158] sm:$0xff] %v617_v34  ;;  %v619_v44 = vadd.f32 %v491_v33, %v363_v35  ;;  %v238_v47 = vld [vmem:[#allocation5 + $0x180] sm:$0xff]  ;;  %v620_v49 = vadd.f32 %v492_v38, %v364_v40  ;;  %v239_v52 = vld [vmem:[#allocation5 + $0x188] sm:$0xff]  ;;  %v112_v56 = vld [vmem:[#allocation2 + $0x190] sm:$0xff] }
  0x40   :  { %v494_v48 = vld [vmem:[#allocation7 + $0x180] sm:$0xff]  ;;  %746 = vst [vmem:[#allocation8 + $0x160] sm:$0xff] %v618_v39  ;;  %v366_v50 = vadd.f32 %v238_v47, %v110_v46  ;;  %v495_v53 = vld [vmem:[#allocation7 + $0x188] sm:$0xff]  ;;  %v621_v54 = vadd.f32 %v493_v43, %v365_v45  ;;  %v367_v55 = vadd.f32 %v239_v52, %v111_v51  ;;  %v240_v57 = vld [vmem:[#allocation5 + $0x190] sm:$0xff] }
  0x41   :  { %747 = vst [vmem:[#allocation8 + $0x168] sm:$0xff] %v619_v44  ;;  %v496_v58 = vld [vmem:[#allocation7 + $0x190] sm:$0xff]  ;;  %v368_v60 = vadd.f32 %v240_v57, %v112_v56  ;;  %v113_v61 = vld [vmem:[#allocation2 + $0x198] sm:$0xff]  ;;  %v114_v2 = vld [vmem:[#allocation2 + $0x1a0] sm:$0xff] }
  0x42   :  { %748 = vst [vmem:[#allocation8 + $0x170] sm:$0xff] %v620_v49  ;;  %v622_v59 = vadd.f32 %v494_v48, %v366_v50  ;;  %v241_v62 = vld [vmem:[#allocation5 + $0x198] sm:$0xff]  ;;  %v623_v0 = vadd.f32 %v495_v53, %v367_v55  ;;  %v242_v3 = vld [vmem:[#allocation5 + $0x1a0] sm:$0xff]  ;;  %v115_v7 = vld [vmem:[#allocation2 + $0x1a8] sm:$0xff] }
  0x43   :  { %v497_v63 = vld [vmem:[#allocation7 + $0x198] sm:$0xff]  ;;  %749 = vst [vmem:[#allocation8 + $0x178] sm:$0xff] %v621_v54  ;;  %v369_v1 = vadd.f32 %v241_v62, %v113_v61  ;;  %v498_v4 = vld [vmem:[#allocation7 + $0x1a0] sm:$0xff]  ;;  %v624_v5 = vadd.f32 %v496_v58, %v368_v60  ;;  %v370_v6 = vadd.f32 %v242_v3, %v114_v2  ;;  %v243_v8 = vld [vmem:[#allocation5 + $0x1a8] sm:$0xff] }
  0x44   :  { %750 = vst [vmem:[#allocation8 + $0x180] sm:$0xff] %v622_v59  ;;  %v499_v9 = vld [vmem:[#allocation7 + $0x1a8] sm:$0xff]  ;;  %v371_v11 = vadd.f32 %v243_v8, %v115_v7  ;;  %v116_v12 = vld [vmem:[#allocation2 + $0x1b0] sm:$0xff]  ;;  %v117_v17 = vld [vmem:[#allocation2 + $0x1b8] sm:$0xff] }
  0x45   :  { %751 = vst [vmem:[#allocation8 + $0x188] sm:$0xff] %v623_v0  ;;  %v625_v10 = vadd.f32 %v497_v63, %v369_v1  ;;  %v244_v13 = vld [vmem:[#allocation5 + $0x1b0] sm:$0xff]  ;;  %v626_v15 = vadd.f32 %v498_v4, %v370_v6  ;;  %v245_v18 = vld [vmem:[#allocation5 + $0x1b8] sm:$0xff]  ;;  %v118_v22 = vld [vmem:[#allocation2 + $0x1c0] sm:$0xff] }
  0x46   :  { %v500_v14 = vld [vmem:[#allocation7 + $0x1b0] sm:$0xff]  ;;  %752 = vst [vmem:[#allocation8 + $0x190] sm:$0xff] %v624_v5  ;;  %v372_v16 = vadd.f32 %v244_v13, %v116_v12  ;;  %v501_v19 = vld [vmem:[#allocation7 + $0x1b8] sm:$0xff]  ;;  %v627_v20 = vadd.f32 %v499_v9, %v371_v11  ;;  %v373_v21 = vadd.f32 %v245_v18, %v117_v17  ;;  %v246_v23 = vld [vmem:[#allocation5 + $0x1c0] sm:$0xff] }
  0x47   :  { %753 = vst [vmem:[#allocation8 + $0x198] sm:$0xff] %v625_v10  ;;  %v502_v24 = vld [vmem:[#allocation7 + $0x1c0] sm:$0xff]  ;;  %v374_v26 = vadd.f32 %v246_v23, %v118_v22  ;;  %v119_v27 = vld [vmem:[#allocation2 + $0x1c8] sm:$0xff]  ;;  %v120_v32 = vld [vmem:[#allocation2 + $0x1d0] sm:$0xff] }
  0x48   :  { %754 = vst [vmem:[#allocation8 + $0x1a0] sm:$0xff] %v626_v15  ;;  %v628_v25 = vadd.f32 %v500_v14, %v372_v16  ;;  %v247_v28 = vld [vmem:[#allocation5 + $0x1c8] sm:$0xff]  ;;  %v629_v30 = vadd.f32 %v501_v19, %v373_v21  ;;  %v248_v33 = vld [vmem:[#allocation5 + $0x1d0] sm:$0xff]  ;;  %v121_v37 = vld [vmem:[#allocation2 + $0x1d8] sm:$0xff] }
  0x49   :  { %v503_v29 = vld [vmem:[#allocation7 + $0x1c8] sm:$0xff]  ;;  %755 = vst [vmem:[#allocation8 + $0x1a8] sm:$0xff] %v627_v20  ;;  %v375_v31 = vadd.f32 %v247_v28, %v119_v27  ;;  %v504_v34 = vld [vmem:[#allocation7 + $0x1d0] sm:$0xff]  ;;  %v630_v35 = vadd.f32 %v502_v24, %v374_v26  ;;  %v376_v36 = vadd.f32 %v248_v33, %v120_v32  ;;  %v249_v38 = vld [vmem:[#allocation5 + $0x1d8] sm:$0xff] }
  0x4a   :  { %756 = vst [vmem:[#allocation8 + $0x1b0] sm:$0xff] %v628_v25  ;;  %v505_v39 = vld [vmem:[#allocation7 + $0x1d8] sm:$0xff]  ;;  %v377_v41 = vadd.f32 %v249_v38, %v121_v37  ;;  %v122_v42 = vld [vmem:[#allocation2 + $0x1e0] sm:$0xff]  ;;  %v123_v47 = vld [vmem:[#allocation2 + $0x1e8] sm:$0xff] }
  0x4b   :  { %757 = vst [vmem:[#allocation8 + $0x1b8] sm:$0xff] %v629_v30  ;;  %v631_v40 = vadd.f32 %v503_v29, %v375_v31  ;;  %v250_v43 = vld [vmem:[#allocation5 + $0x1e0] sm:$0xff]  ;;  %v632_v45 = vadd.f32 %v504_v34, %v376_v36  ;;  %v251_v48 = vld [vmem:[#allocation5 + $0x1e8] sm:$0xff]  ;;  %v124_v52 = vld [vmem:[#allocation2 + $0x1f0] sm:$0xff] }
  0x4c   :  { %v506_v44 = vld [vmem:[#allocation7 + $0x1e0] sm:$0xff]  ;;  %758 = vst [vmem:[#allocation8 + $0x1c0] sm:$0xff] %v630_v35  ;;  %v378_v46 = vadd.f32 %v250_v43, %v122_v42  ;;  %v507_v49 = vld [vmem:[#allocation7 + $0x1e8] sm:$0xff]  ;;  %v633_v50 = vadd.f32 %v505_v39, %v377_v41  ;;  %v379_v51 = vadd.f32 %v251_v48, %v123_v47  ;;  %v252_v53 = vld [vmem:[#allocation5 + $0x1f0] sm:$0xff] }
  0x4d   :  { %759 = vst [vmem:[#allocation8 + $0x1c8] sm:$0xff] %v631_v40  ;;  %v508_v54 = vld [vmem:[#allocation7 + $0x1f0] sm:$0xff]  ;;  %v380_v56 = vadd.f32 %v252_v53, %v124_v52  ;;  %v125_v57 = vld [vmem:[#allocation2 + $0x1f8] sm:$0xff]  ;;  %v126_v62 = vld [vmem:[#allocation2 + $0x200] sm:$0xff] }
  0x4e   :  { %760 = vst [vmem:[#allocation8 + $0x1d0] sm:$0xff] %v632_v45  ;;  %v634_v55 = vadd.f32 %v506_v44, %v378_v46  ;;  %v253_v58 = vld [vmem:[#allocation5 + $0x1f8] sm:$0xff]  ;;  %v635_v60 = vadd.f32 %v507_v49, %v379_v51  ;;  %v254_v63 = vld [vmem:[#allocation5 + $0x200] sm:$0xff]  ;;  %v127_v3 = vld [vmem:[#allocation2 + $0x208] sm:$0xff] }
  0x4f   :  { %v509_v59 = vld [vmem:[#allocation7 + $0x1f8] sm:$0xff]  ;;  %761 = vst [vmem:[#allocation8 + $0x1d8] sm:$0xff] %v633_v50  ;;  %v381_v61 = vadd.f32 %v253_v58, %v125_v57  ;;  %v510_v0 = vld [vmem:[#allocation7 + $0x200] sm:$0xff]  ;;  %v636_v1 = vadd.f32 %v508_v54, %v380_v56  ;;  %v382_v2 = vadd.f32 %v254_v63, %v126_v62  ;;  %v255_v4 = vld [vmem:[#allocation5 + $0x208] sm:$0xff] }
  0x50   :  { %762 = vst [vmem:[#allocation8 + $0x1e0] sm:$0xff] %v634_v55  ;;  %v511_v5 = vld [vmem:[#allocation7 + $0x208] sm:$0xff]  ;;  %v383_v7 = vadd.f32 %v255_v4, %v127_v3  ;;  %v128_v8 = vld [vmem:[#allocation2 + $0x210] sm:$0xff]  ;;  %v129_v13 = vld [vmem:[#allocation2 + $0x218] sm:$0xff] }
  0x51   :  { %763 = vst [vmem:[#allocation8 + $0x1e8] sm:$0xff] %v635_v60  ;;  %v637_v6 = vadd.f32 %v509_v59, %v381_v61  ;;  %v256_v9 = vld [vmem:[#allocation5 + $0x210] sm:$0xff]  ;;  %v638_v11 = vadd.f32 %v510_v0, %v382_v2  ;;  %v257_v14 = vld [vmem:[#allocation5 + $0x218] sm:$0xff]  ;;  %v130_v18 = vld [vmem:[#allocation2 + $0x220] sm:$0xff] }
  0x52   :  { %v512_v10 = vld [vmem:[#allocation7 + $0x210] sm:$0xff]  ;;  %764 = vst [vmem:[#allocation8 + $0x1f0] sm:$0xff] %v636_v1  ;;  %v384_v12 = vadd.f32 %v256_v9, %v128_v8  ;;  %v513_v15 = vld [vmem:[#allocation7 + $0x218] sm:$0xff]  ;;  %v639_v16 = vadd.f32 %v511_v5, %v383_v7  ;;  %v385_v17 = vadd.f32 %v257_v14, %v129_v13  ;;  %v258_v19 = vld [vmem:[#allocation5 + $0x220] sm:$0xff] }
  0x53   :  { %765 = vst [vmem:[#allocation8 + $0x1f8] sm:$0xff] %v637_v6  ;;  %v514_v20 = vld [vmem:[#allocation7 + $0x220] sm:$0xff]  ;;  %v386_v22 = vadd.f32 %v258_v19, %v130_v18  ;;  %v131_v23 = vld [vmem:[#allocation2 + $0x228] sm:$0xff]  ;;  %v132_v28 = vld [vmem:[#allocation2 + $0x230] sm:$0xff] }
  0x54   :  { %766 = vst [vmem:[#allocation8 + $0x200] sm:$0xff] %v638_v11  ;;  %v640_v21 = vadd.f32 %v512_v10, %v384_v12  ;;  %v259_v24 = vld [vmem:[#allocation5 + $0x228] sm:$0xff]  ;;  %v641_v26 = vadd.f32 %v513_v15, %v385_v17  ;;  %v260_v29 = vld [vmem:[#allocation5 + $0x230] sm:$0xff]  ;;  %v133_v33 = vld [vmem:[#allocation2 + $0x238] sm:$0xff] }
  0x55   :  { %v515_v25 = vld [vmem:[#allocation7 + $0x228] sm:$0xff]  ;;  %767 = vst [vmem:[#allocation8 + $0x208] sm:$0xff] %v639_v16  ;;  %v387_v27 = vadd.f32 %v259_v24, %v131_v23  ;;  %v516_v30 = vld [vmem:[#allocation7 + $0x230] sm:$0xff]  ;;  %v642_v31 = vadd.f32 %v514_v20, %v386_v22  ;;  %v388_v32 = vadd.f32 %v260_v29, %v132_v28  ;;  %v261_v34 = vld [vmem:[#allocation5 + $0x238] sm:$0xff] }
  0x56   :  { %768 = vst [vmem:[#allocation8 + $0x210] sm:$0xff] %v640_v21  ;;  %v517_v35 = vld [vmem:[#allocation7 + $0x238] sm:$0xff]  ;;  %v389_v37 = vadd.f32 %v261_v34, %v133_v33  ;;  %v134_v38 = vld [vmem:[#allocation2 + $0x240] sm:$0xff]  ;;  %v135_v43 = vld [vmem:[#allocation2 + $0x248] sm:$0xff] }
  0x57   :  { %769 = vst [vmem:[#allocation8 + $0x218] sm:$0xff] %v641_v26  ;;  %v643_v36 = vadd.f32 %v515_v25, %v387_v27  ;;  %v262_v39 = vld [vmem:[#allocation5 + $0x240] sm:$0xff]  ;;  %v644_v41 = vadd.f32 %v516_v30, %v388_v32  ;;  %v263_v44 = vld [vmem:[#allocation5 + $0x248] sm:$0xff]  ;;  %v136_v48 = vld [vmem:[#allocation2 + $0x250] sm:$0xff] }
  0x58   :  { %v518_v40 = vld [vmem:[#allocation7 + $0x240] sm:$0xff]  ;;  %770 = vst [vmem:[#allocation8 + $0x220] sm:$0xff] %v642_v31  ;;  %v390_v42 = vadd.f32 %v262_v39, %v134_v38  ;;  %v519_v45 = vld [vmem:[#allocation7 + $0x248] sm:$0xff]  ;;  %v645_v46 = vadd.f32 %v517_v35, %v389_v37  ;;  %v391_v47 = vadd.f32 %v263_v44, %v135_v43  ;;  %v264_v49 = vld [vmem:[#allocation5 + $0x250] sm:$0xff] }
  0x59   :  { %771 = vst [vmem:[#allocation8 + $0x228] sm:$0xff] %v643_v36  ;;  %v520_v50 = vld [vmem:[#allocation7 + $0x250] sm:$0xff]  ;;  %v392_v52 = vadd.f32 %v264_v49, %v136_v48  ;;  %v137_v53 = vld [vmem:[#allocation2 + $0x258] sm:$0xff]  ;;  %v138_v58 = vld [vmem:[#allocation2 + $0x260] sm:$0xff] }
  0x5a   :  { %772 = vst [vmem:[#allocation8 + $0x230] sm:$0xff] %v644_v41  ;;  %v646_v51 = vadd.f32 %v518_v40, %v390_v42  ;;  %v265_v54 = vld [vmem:[#allocation5 + $0x258] sm:$0xff]  ;;  %v647_v56 = vadd.f32 %v519_v45, %v391_v47  ;;  %v266_v59 = vld [vmem:[#allocation5 + $0x260] sm:$0xff]  ;;  %v139_v63 = vld [vmem:[#allocation2 + $0x268] sm:$0xff] }
  0x5b   :  { %v521_v55 = vld [vmem:[#allocation7 + $0x258] sm:$0xff]  ;;  %773 = vst [vmem:[#allocation8 + $0x238] sm:$0xff] %v645_v46  ;;  %v393_v57 = vadd.f32 %v265_v54, %v137_v53  ;;  %v522_v60 = vld [vmem:[#allocation7 + $0x260] sm:$0xff]  ;;  %v648_v61 = vadd.f32 %v520_v50, %v392_v52  ;;  %v394_v62 = vadd.f32 %v266_v59, %v138_v58  ;;  %v267_v0 = vld [vmem:[#allocation5 + $0x268] sm:$0xff] }
  0x5c   :  { %774 = vst [vmem:[#allocation8 + $0x240] sm:$0xff] %v646_v51  ;;  %v523_v1 = vld [vmem:[#allocation7 + $0x268] sm:$0xff]  ;;  %v395_v3 = vadd.f32 %v267_v0, %v139_v63  ;;  %v140_v4 = vld [vmem:[#allocation2 + $0x270] sm:$0xff]  ;;  %v141_v9 = vld [vmem:[#allocation2 + $0x278] sm:$0xff] }
  0x5d   :  { %775 = vst [vmem:[#allocation8 + $0x248] sm:$0xff] %v647_v56  ;;  %v649_v2 = vadd.f32 %v521_v55, %v393_v57  ;;  %v268_v5 = vld [vmem:[#allocation5 + $0x270] sm:$0xff]  ;;  %v650_v7 = vadd.f32 %v522_v60, %v394_v62  ;;  %v269_v10 = vld [vmem:[#allocation5 + $0x278] sm:$0xff]  ;;  %v142_v14 = vld [vmem:[#allocation2 + $0x280] sm:$0xff] }
  0x5e   :  { %v524_v6 = vld [vmem:[#allocation7 + $0x270] sm:$0xff]  ;;  %776 = vst [vmem:[#allocation8 + $0x250] sm:$0xff] %v648_v61  ;;  %v396_v8 = vadd.f32 %v268_v5, %v140_v4  ;;  %v525_v11 = vld [vmem:[#allocation7 + $0x278] sm:$0xff]  ;;  %v651_v12 = vadd.f32 %v523_v1, %v395_v3  ;;  %v397_v13 = vadd.f32 %v269_v10, %v141_v9  ;;  %v270_v15 = vld [vmem:[#allocation5 + $0x280] sm:$0xff] }
  0x5f   :  { %777 = vst [vmem:[#allocation8 + $0x258] sm:$0xff] %v649_v2  ;;  %v526_v16 = vld [vmem:[#allocation7 + $0x280] sm:$0xff]  ;;  %v398_v18 = vadd.f32 %v270_v15, %v142_v14  ;;  %v143_v19 = vld [vmem:[#allocation2 + $0x288] sm:$0xff]  ;;  %v144_v24 = vld [vmem:[#allocation2 + $0x290] sm:$0xff] }
  0x60   :  { %778 = vst [vmem:[#allocation8 + $0x260] sm:$0xff] %v650_v7  ;;  %v652_v17 = vadd.f32 %v524_v6, %v396_v8  ;;  %v271_v20 = vld [vmem:[#allocation5 + $0x288] sm:$0xff]  ;;  %v653_v22 = vadd.f32 %v525_v11, %v397_v13  ;;  %v272_v25 = vld [vmem:[#allocation5 + $0x290] sm:$0xff]  ;;  %v145_v29 = vld [vmem:[#allocation2 + $0x298] sm:$0xff] }
  0x61   :  { %v527_v21 = vld [vmem:[#allocation7 + $0x288] sm:$0xff]  ;;  %779 = vst [vmem:[#allocation8 + $0x268] sm:$0xff] %v651_v12  ;;  %v399_v23 = vadd.f32 %v271_v20, %v143_v19  ;;  %v528_v26 = vld [vmem:[#allocation7 + $0x290] sm:$0xff]  ;;  %v654_v27 = vadd.f32 %v526_v16, %v398_v18  ;;  %v400_v28 = vadd.f32 %v272_v25, %v144_v24  ;;  %v273_v30 = vld [vmem:[#allocation5 + $0x298] sm:$0xff] }
  0x62   :  { %780 = vst [vmem:[#allocation8 + $0x270] sm:$0xff] %v652_v17  ;;  %v529_v31 = vld [vmem:[#allocation7 + $0x298] sm:$0xff]  ;;  %v401_v33 = vadd.f32 %v273_v30, %v145_v29  ;;  %v146_v34 = vld [vmem:[#allocation2 + $0x2a0] sm:$0xff]  ;;  %v147_v39 = vld [vmem:[#allocation2 + $0x2a8] sm:$0xff] }
  0x63   :  { %781 = vst [vmem:[#allocation8 + $0x278] sm:$0xff] %v653_v22  ;;  %v655_v32 = vadd.f32 %v527_v21, %v399_v23  ;;  %v274_v35 = vld [vmem:[#allocation5 + $0x2a0] sm:$0xff]  ;;  %v656_v37 = vadd.f32 %v528_v26, %v400_v28  ;;  %v275_v40 = vld [vmem:[#allocation5 + $0x2a8] sm:$0xff]  ;;  %v148_v44 = vld [vmem:[#allocation2 + $0x2b0] sm:$0xff] }
  0x64   :  { %v530_v36 = vld [vmem:[#allocation7 + $0x2a0] sm:$0xff]  ;;  %782 = vst [vmem:[#allocation8 + $0x280] sm:$0xff] %v654_v27  ;;  %v402_v38 = vadd.f32 %v274_v35, %v146_v34  ;;  %v531_v41 = vld [vmem:[#allocation7 + $0x2a8] sm:$0xff]  ;;  %v657_v42 = vadd.f32 %v529_v31, %v401_v33  ;;  %v403_v43 = vadd.f32 %v275_v40, %v147_v39  ;;  %v276_v45 = vld [vmem:[#allocation5 + $0x2b0] sm:$0xff] }
  0x65   :  { %783 = vst [vmem:[#allocation8 + $0x288] sm:$0xff] %v655_v32  ;;  %v532_v46 = vld [vmem:[#allocation7 + $0x2b0] sm:$0xff]  ;;  %v404_v48 = vadd.f32 %v276_v45, %v148_v44  ;;  %v149_v49 = vld [vmem:[#allocation2 + $0x2b8] sm:$0xff]  ;;  %v150_v54 = vld [vmem:[#allocation2 + $0x2c0] sm:$0xff] }
  0x66   :  { %784 = vst [vmem:[#allocation8 + $0x290] sm:$0xff] %v656_v37  ;;  %v658_v47 = vadd.f32 %v530_v36, %v402_v38  ;;  %v277_v50 = vld [vmem:[#allocation5 + $0x2b8] sm:$0xff]  ;;  %v659_v52 = vadd.f32 %v531_v41, %v403_v43  ;;  %v278_v55 = vld [vmem:[#allocation5 + $0x2c0] sm:$0xff]  ;;  %v151_v59 = vld [vmem:[#allocation2 + $0x2c8] sm:$0xff] }
  0x67   :  { %v533_v51 = vld [vmem:[#allocation7 + $0x2b8] sm:$0xff]  ;;  %785 = vst [vmem:[#allocation8 + $0x298] sm:$0xff] %v657_v42  ;;  %v405_v53 = vadd.f32 %v277_v50, %v149_v49  ;;  %v534_v56 = vld [vmem:[#allocation7 + $0x2c0] sm:$0xff]  ;;  %v660_v57 = vadd.f32 %v532_v46, %v404_v48  ;;  %v406_v58 = vadd.f32 %v278_v55, %v150_v54  ;;  %v279_v60 = vld [vmem:[#allocation5 + $0x2c8] sm:$0xff] }
  0x68   :  { %786 = vst [vmem:[#allocation8 + $0x2a0] sm:$0xff] %v658_v47  ;;  %v535_v61 = vld [vmem:[#allocation7 + $0x2c8] sm:$0xff]  ;;  %v407_v63 = vadd.f32 %v279_v60, %v151_v59  ;;  %v152_v0 = vld [vmem:[#allocation2 + $0x2d0] sm:$0xff]  ;;  %v153_v5 = vld [vmem:[#allocation2 + $0x2d8] sm:$0xff] }
  0x69   :  { %787 = vst [vmem:[#allocation8 + $0x2a8] sm:$0xff] %v659_v52  ;;  %v661_v62 = vadd.f32 %v533_v51, %v405_v53  ;;  %v280_v1 = vld [vmem:[#allocation5 + $0x2d0] sm:$0xff]  ;;  %v662_v3 = vadd.f32 %v534_v56, %v406_v58  ;;  %v281_v6 = vld [vmem:[#allocation5 + $0x2d8] sm:$0xff]  ;;  %v154_v10 = vld [vmem:[#allocation2 + $0x2e0] sm:$0xff] }
  0x6a   :  { %v536_v2 = vld [vmem:[#allocation7 + $0x2d0] sm:$0xff]  ;;  %788 = vst [vmem:[#allocation8 + $0x2b0] sm:$0xff] %v660_v57  ;;  %v408_v4 = vadd.f32 %v280_v1, %v152_v0  ;;  %v537_v7 = vld [vmem:[#allocation7 + $0x2d8] sm:$0xff]  ;;  %v663_v8 = vadd.f32 %v535_v61, %v407_v63  ;;  %v409_v9 = vadd.f32 %v281_v6, %v153_v5  ;;  %v282_v11 = vld [vmem:[#allocation5 + $0x2e0] sm:$0xff] }
  0x6b   :  { %789 = vst [vmem:[#allocation8 + $0x2b8] sm:$0xff] %v661_v62  ;;  %v538_v12 = vld [vmem:[#allocation7 + $0x2e0] sm:$0xff]  ;;  %v410_v14 = vadd.f32 %v282_v11, %v154_v10  ;;  %v155_v15 = vld [vmem:[#allocation2 + $0x2e8] sm:$0xff]  ;;  %v156_v20 = vld [vmem:[#allocation2 + $0x2f0] sm:$0xff] }
  0x6c   :  { %790 = vst [vmem:[#allocation8 + $0x2c0] sm:$0xff] %v662_v3  ;;  %v664_v13 = vadd.f32 %v536_v2, %v408_v4  ;;  %v283_v16 = vld [vmem:[#allocation5 + $0x2e8] sm:$0xff]  ;;  %v665_v18 = vadd.f32 %v537_v7, %v409_v9  ;;  %v284_v21 = vld [vmem:[#allocation5 + $0x2f0] sm:$0xff]  ;;  %v157_v25 = vld [vmem:[#allocation2 + $0x2f8] sm:$0xff] }
  0x6d   :  { %v539_v17 = vld [vmem:[#allocation7 + $0x2e8] sm:$0xff]  ;;  %791 = vst [vmem:[#allocation8 + $0x2c8] sm:$0xff] %v663_v8  ;;  %v411_v19 = vadd.f32 %v283_v16, %v155_v15  ;;  %v540_v22 = vld [vmem:[#allocation7 + $0x2f0] sm:$0xff]  ;;  %v666_v23 = vadd.f32 %v538_v12, %v410_v14  ;;  %v412_v24 = vadd.f32 %v284_v21, %v156_v20  ;;  %v285_v26 = vld [vmem:[#allocation5 + $0x2f8] sm:$0xff] }
  0x6e   :  { %792 = vst [vmem:[#allocation8 + $0x2d0] sm:$0xff] %v664_v13  ;;  %v541_v27 = vld [vmem:[#allocation7 + $0x2f8] sm:$0xff]  ;;  %v413_v29 = vadd.f32 %v285_v26, %v157_v25  ;;  %v158_v30 = vld [vmem:[#allocation2 + $0x300] sm:$0xff]  ;;  %v159_v35 = vld [vmem:[#allocation2 + $0x308] sm:$0xff] }
  0x6f   :  { %793 = vst [vmem:[#allocation8 + $0x2d8] sm:$0xff] %v665_v18  ;;  %v667_v28 = vadd.f32 %v539_v17, %v411_v19  ;;  %v286_v31 = vld [vmem:[#allocation5 + $0x300] sm:$0xff]  ;;  %v668_v33 = vadd.f32 %v540_v22, %v412_v24  ;;  %v287_v36 = vld [vmem:[#allocation5 + $0x308] sm:$0xff]  ;;  %v160_v40 = vld [vmem:[#allocation2 + $0x310] sm:$0xff] }
  0x70   :  { %v542_v32 = vld [vmem:[#allocation7 + $0x300] sm:$0xff]  ;;  %794 = vst [vmem:[#allocation8 + $0x2e0] sm:$0xff] %v666_v23  ;;  %v414_v34 = vadd.f32 %v286_v31, %v158_v30  ;;  %v543_v37 = vld [vmem:[#allocation7 + $0x308] sm:$0xff]  ;;  %v669_v38 = vadd.f32 %v541_v27, %v413_v29  ;;  %v415_v39 = vadd.f32 %v287_v36, %v159_v35  ;;  %v288_v41 = vld [vmem:[#allocation5 + $0x310] sm:$0xff] }
  0x71   :  { %795 = vst [vmem:[#allocation8 + $0x2e8] sm:$0xff] %v667_v28  ;;  %v544_v42 = vld [vmem:[#allocation7 + $0x310] sm:$0xff]  ;;  %v416_v44 = vadd.f32 %v288_v41, %v160_v40  ;;  %v161_v45 = vld [vmem:[#allocation2 + $0x318] sm:$0xff]  ;;  %v162_v50 = vld [vmem:[#allocation2 + $0x320] sm:$0xff] }
  0x72   :  { %796 = vst [vmem:[#allocation8 + $0x2f0] sm:$0xff] %v668_v33  ;;  %v670_v43 = vadd.f32 %v542_v32, %v414_v34  ;;  %v289_v46 = vld [vmem:[#allocation5 + $0x318] sm:$0xff]  ;;  %v671_v48 = vadd.f32 %v543_v37, %v415_v39  ;;  %v290_v51 = vld [vmem:[#allocation5 + $0x320] sm:$0xff]  ;;  %v163_v55 = vld [vmem:[#allocation2 + $0x328] sm:$0xff] }
  0x73   :  { %v545_v47 = vld [vmem:[#allocation7 + $0x318] sm:$0xff]  ;;  %797 = vst [vmem:[#allocation8 + $0x2f8] sm:$0xff] %v669_v38  ;;  %v417_v49 = vadd.f32 %v289_v46, %v161_v45  ;;  %v546_v52 = vld [vmem:[#allocation7 + $0x320] sm:$0xff]  ;;  %v672_v53 = vadd.f32 %v544_v42, %v416_v44  ;;  %v418_v54 = vadd.f32 %v290_v51, %v162_v50  ;;  %v291_v56 = vld [vmem:[#allocation5 + $0x328] sm:$0xff] }
  0x74   :  { %798 = vst [vmem:[#allocation8 + $0x300] sm:$0xff] %v670_v43  ;;  %v547_v57 = vld [vmem:[#allocation7 + $0x328] sm:$0xff]  ;;  %v419_v59 = vadd.f32 %v291_v56, %v163_v55  ;;  %v164_v60 = vld [vmem:[#allocation2 + $0x330] sm:$0xff]  ;;  %v165_v1 = vld [vmem:[#allocation2 + $0x338] sm:$0xff] }
  0x75   :  { %799 = vst [vmem:[#allocation8 + $0x308] sm:$0xff] %v671_v48  ;;  %v673_v58 = vadd.f32 %v545_v47, %v417_v49  ;;  %v292_v61 = vld [vmem:[#allocation5 + $0x330] sm:$0xff]  ;;  %v674_v63 = vadd.f32 %v546_v52, %v418_v54  ;;  %v293_v2 = vld [vmem:[#allocation5 + $0x338] sm:$0xff]  ;;  %v166_v6 = vld [vmem:[#allocation2 + $0x340] sm:$0xff] }
  0x76   :  { %v548_v62 = vld [vmem:[#allocation7 + $0x330] sm:$0xff]  ;;  %800 = vst [vmem:[#allocation8 + $0x310] sm:$0xff] %v672_v53  ;;  %v420_v0 = vadd.f32 %v292_v61, %v164_v60  ;;  %v549_v3 = vld [vmem:[#allocation7 + $0x338] sm:$0xff]  ;;  %v675_v4 = vadd.f32 %v547_v57, %v419_v59  ;;  %v421_v5 = vadd.f32 %v293_v2, %v165_v1  ;;  %v294_v7 = vld [vmem:[#allocation5 + $0x340] sm:$0xff] }
  0x77   :  { %801 = vst [vmem:[#allocation8 + $0x318] sm:$0xff] %v673_v58  ;;  %v550_v8 = vld [vmem:[#allocation7 + $0x340] sm:$0xff]  ;;  %v422_v10 = vadd.f32 %v294_v7, %v166_v6  ;;  %v167_v11 = vld [vmem:[#allocation2 + $0x348] sm:$0xff]  ;;  %v168_v16 = vld [vmem:[#allocation2 + $0x350] sm:$0xff] }
  0x78   :  { %802 = vst [vmem:[#allocation8 + $0x320] sm:$0xff] %v674_v63  ;;  %v676_v9 = vadd.f32 %v548_v62, %v420_v0  ;;  %v295_v12 = vld [vmem:[#allocation5 + $0x348] sm:$0xff]  ;;  %v677_v14 = vadd.f32 %v549_v3, %v421_v5  ;;  %v296_v17 = vld [vmem:[#allocation5 + $0x350] sm:$0xff]  ;;  %v169_v21 = vld [vmem:[#allocation2 + $0x358] sm:$0xff] }
  0x79   :  { %v551_v13 = vld [vmem:[#allocation7 + $0x348] sm:$0xff]  ;;  %803 = vst [vmem:[#allocation8 + $0x328] sm:$0xff] %v675_v4  ;;  %v423_v15 = vadd.f32 %v295_v12, %v167_v11  ;;  %v552_v18 = vld [vmem:[#allocation7 + $0x350] sm:$0xff]  ;;  %v678_v19 = vadd.f32 %v550_v8, %v422_v10  ;;  %v424_v20 = vadd.f32 %v296_v17, %v168_v16  ;;  %v297_v22 = vld [vmem:[#allocation5 + $0x358] sm:$0xff] }
  0x7a   :  { %804 = vst [vmem:[#allocation8 + $0x330] sm:$0xff] %v676_v9  ;;  %v553_v23 = vld [vmem:[#allocation7 + $0x358] sm:$0xff]  ;;  %v425_v25 = vadd.f32 %v297_v22, %v169_v21  ;;  %v170_v26 = vld [vmem:[#allocation2 + $0x360] sm:$0xff]  ;;  %v171_v31 = vld [vmem:[#allocation2 + $0x368] sm:$0xff] }
  0x7b   :  { %805 = vst [vmem:[#allocation8 + $0x338] sm:$0xff] %v677_v14  ;;  %v679_v24 = vadd.f32 %v551_v13, %v423_v15  ;;  %v298_v27 = vld [vmem:[#allocation5 + $0x360] sm:$0xff]  ;;  %v680_v29 = vadd.f32 %v552_v18, %v424_v20  ;;  %v299_v32 = vld [vmem:[#allocation5 + $0x368] sm:$0xff]  ;;  %v172_v36 = vld [vmem:[#allocation2 + $0x370] sm:$0xff] }
  0x7c   :  { %v554_v28 = vld [vmem:[#allocation7 + $0x360] sm:$0xff]  ;;  %806 = vst [vmem:[#allocation8 + $0x340] sm:$0xff] %v678_v19  ;;  %v426_v30 = vadd.f32 %v298_v27, %v170_v26  ;;  %v555_v33 = vld [vmem:[#allocation7 + $0x368] sm:$0xff]  ;;  %v681_v34 = vadd.f32 %v553_v23, %v425_v25  ;;  %v427_v35 = vadd.f32 %v299_v32, %v171_v31  ;;  %v300_v37 = vld [vmem:[#allocation5 + $0x370] sm:$0xff] }
  0x7d   :  { %807 = vst [vmem:[#allocation8 + $0x348] sm:$0xff] %v679_v24  ;;  %v556_v38 = vld [vmem:[#allocation7 + $0x370] sm:$0xff]  ;;  %v428_v40 = vadd.f32 %v300_v37, %v172_v36  ;;  %v173_v41 = vld [vmem:[#allocation2 + $0x378] sm:$0xff]  ;;  %v174_v46 = vld [vmem:[#allocation2 + $0x380] sm:$0xff] }
  0x7e   :  { %808 = vst [vmem:[#allocation8 + $0x350] sm:$0xff] %v680_v29  ;;  %v682_v39 = vadd.f32 %v554_v28, %v426_v30  ;;  %v301_v42 = vld [vmem:[#allocation5 + $0x378] sm:$0xff]  ;;  %v683_v44 = vadd.f32 %v555_v33, %v427_v35  ;;  %v302_v47 = vld [vmem:[#allocation5 + $0x380] sm:$0xff]  ;;  %v175_v51 = vld [vmem:[#allocation2 + $0x388] sm:$0xff] }
  0x7f   :  { %v557_v43 = vld [vmem:[#allocation7 + $0x378] sm:$0xff]  ;;  %809 = vst [vmem:[#allocation8 + $0x358] sm:$0xff] %v681_v34  ;;  %v429_v45 = vadd.f32 %v301_v42, %v173_v41  ;;  %v558_v48 = vld [vmem:[#allocation7 + $0x380] sm:$0xff]  ;;  %v684_v49 = vadd.f32 %v556_v38, %v428_v40  ;;  %v430_v50 = vadd.f32 %v302_v47, %v174_v46  ;;  %v303_v52 = vld [vmem:[#allocation5 + $0x388] sm:$0xff] }
  0x80   :  { %810 = vst [vmem:[#allocation8 + $0x360] sm:$0xff] %v682_v39  ;;  %v559_v53 = vld [vmem:[#allocation7 + $0x388] sm:$0xff]  ;;  %v431_v55 = vadd.f32 %v303_v52, %v175_v51  ;;  %v176_v56 = vld [vmem:[#allocation2 + $0x390] sm:$0xff]  ;;  %v177_v61 = vld [vmem:[#allocation2 + $0x398] sm:$0xff] }
  0x81   :  { %811 = vst [vmem:[#allocation8 + $0x368] sm:$0xff] %v683_v44  ;;  %v685_v54 = vadd.f32 %v557_v43, %v429_v45  ;;  %v304_v57 = vld [vmem:[#allocation5 + $0x390] sm:$0xff]  ;;  %v686_v59 = vadd.f32 %v558_v48, %v430_v50  ;;  %v305_v62 = vld [vmem:[#allocation5 + $0x398] sm:$0xff]  ;;  %v178_v2 = vld [vmem:[#allocation2 + $0x3a0] sm:$0xff] }
  0x82   :  { %v560_v58 = vld [vmem:[#allocation7 + $0x390] sm:$0xff]  ;;  %812 = vst [vmem:[#allocation8 + $0x370] sm:$0xff] %v684_v49  ;;  %v432_v60 = vadd.f32 %v304_v57, %v176_v56  ;;  %v561_v63 = vld [vmem:[#allocation7 + $0x398] sm:$0xff]  ;;  %v687_v0 = vadd.f32 %v559_v53, %v431_v55  ;;  %v433_v1 = vadd.f32 %v305_v62, %v177_v61  ;;  %v306_v3 = vld [vmem:[#allocation5 + $0x3a0] sm:$0xff] }
  0x83   :  { %813 = vst [vmem:[#allocation8 + $0x378] sm:$0xff] %v685_v54  ;;  %v562_v4 = vld [vmem:[#allocation7 + $0x3a0] sm:$0xff]  ;;  %v434_v6 = vadd.f32 %v306_v3, %v178_v2  ;;  %v179_v7 = vld [vmem:[#allocation2 + $0x3a8] sm:$0xff]  ;;  %v180_v12 = vld [vmem:[#allocation2 + $0x3b0] sm:$0xff] }
  0x84   :  { %814 = vst [vmem:[#allocation8 + $0x380] sm:$0xff] %v686_v59  ;;  %v688_v5 = vadd.f32 %v560_v58, %v432_v60  ;;  %v307_v8 = vld [vmem:[#allocation5 + $0x3a8] sm:$0xff]  ;;  %v689_v10 = vadd.f32 %v561_v63, %v433_v1  ;;  %v308_v13 = vld [vmem:[#allocation5 + $0x3b0] sm:$0xff]  ;;  %v181_v17 = vld [vmem:[#allocation2 + $0x3b8] sm:$0xff] }
  0x85   :  { %v563_v9 = vld [vmem:[#allocation7 + $0x3a8] sm:$0xff]  ;;  %815 = vst [vmem:[#allocation8 + $0x388] sm:$0xff] %v687_v0  ;;  %v435_v11 = vadd.f32 %v307_v8, %v179_v7  ;;  %v564_v14 = vld [vmem:[#allocation7 + $0x3b0] sm:$0xff]  ;;  %v690_v15 = vadd.f32 %v562_v4, %v434_v6  ;;  %v436_v16 = vadd.f32 %v308_v13, %v180_v12  ;;  %v309_v18 = vld [vmem:[#allocation5 + $0x3b8] sm:$0xff] }
  0x86   :  { %816 = vst [vmem:[#allocation8 + $0x390] sm:$0xff] %v688_v5  ;;  %v565_v19 = vld [vmem:[#allocation7 + $0x3b8] sm:$0xff]  ;;  %v437_v21 = vadd.f32 %v309_v18, %v181_v17  ;;  %v182_v22 = vld [vmem:[#allocation2 + $0x3c0] sm:$0xff]  ;;  %v183_v27 = vld [vmem:[#allocation2 + $0x3c8] sm:$0xff] }
  0x87   :  { %817 = vst [vmem:[#allocation8 + $0x398] sm:$0xff] %v689_v10  ;;  %v691_v20 = vadd.f32 %v563_v9, %v435_v11  ;;  %v310_v23 = vld [vmem:[#allocation5 + $0x3c0] sm:$0xff]  ;;  %v692_v25 = vadd.f32 %v564_v14, %v436_v16  ;;  %v311_v28 = vld [vmem:[#allocation5 + $0x3c8] sm:$0xff]  ;;  %v184_v32 = vld [vmem:[#allocation2 + $0x3d0] sm:$0xff] }
  0x88   :  { %v566_v24 = vld [vmem:[#allocation7 + $0x3c0] sm:$0xff]  ;;  %818 = vst [vmem:[#allocation8 + $0x3a0] sm:$0xff] %v690_v15  ;;  %v438_v26 = vadd.f32 %v310_v23, %v182_v22  ;;  %v567_v29 = vld [vmem:[#allocation7 + $0x3c8] sm:$0xff]  ;;  %v693_v30 = vadd.f32 %v565_v19, %v437_v21  ;;  %v439_v31 = vadd.f32 %v311_v28, %v183_v27  ;;  %v312_v33 = vld [vmem:[#allocation5 + $0x3d0] sm:$0xff] }
  0x89   :  { %819 = vst [vmem:[#allocation8 + $0x3a8] sm:$0xff] %v691_v20  ;;  %v568_v34 = vld [vmem:[#allocation7 + $0x3d0] sm:$0xff]  ;;  %v440_v36 = vadd.f32 %v312_v33, %v184_v32  ;;  %v185_v37 = vld [vmem:[#allocation2 + $0x3d8] sm:$0xff]  ;;  %v186_v42 = vld [vmem:[#allocation2 + $0x3e0] sm:$0xff] }
  0x8a   :  { %820 = vst [vmem:[#allocation8 + $0x3b0] sm:$0xff] %v692_v25  ;;  %v694_v35 = vadd.f32 %v566_v24, %v438_v26  ;;  %v313_v38 = vld [vmem:[#allocation5 + $0x3d8] sm:$0xff]  ;;  %v695_v40 = vadd.f32 %v567_v29, %v439_v31  ;;  %v314_v43 = vld [vmem:[#allocation5 + $0x3e0] sm:$0xff]  ;;  %v187_v47 = vld [vmem:[#allocation2 + $0x3e8] sm:$0xff] }
  0x8b   :  { %v569_v39 = vld [vmem:[#allocation7 + $0x3d8] sm:$0xff]  ;;  %821 = vst [vmem:[#allocation8 + $0x3b8] sm:$0xff] %v693_v30  ;;  %v441_v41 = vadd.f32 %v313_v38, %v185_v37  ;;  %v570_v44 = vld [vmem:[#allocation7 + $0x3e0] sm:$0xff]  ;;  %v696_v45 = vadd.f32 %v568_v34, %v440_v36  ;;  %v442_v46 = vadd.f32 %v314_v43, %v186_v42  ;;  %v315_v48 = vld [vmem:[#allocation5 + $0x3e8] sm:$0xff] }
  0x8c   :  { %822 = vst [vmem:[#allocation8 + $0x3c0] sm:$0xff] %v694_v35  ;;  %v571_v49 = vld [vmem:[#allocation7 + $0x3e8] sm:$0xff]  ;;  %v443_v51 = vadd.f32 %v315_v48, %v187_v47  ;;  %v188_v52 = vld [vmem:[#allocation2 + $0x3f0] sm:$0xff]  ;;  %v189_v57 = vld [vmem:[#allocation2 + $0x3f8] sm:$0xff] }
  0x8d   :  { %823 = vst [vmem:[#allocation8 + $0x3c8] sm:$0xff] %v695_v40  ;;  %v697_v50 = vadd.f32 %v569_v39, %v441_v41  ;;  %v316_v53 = vld [vmem:[#allocation5 + $0x3f0] sm:$0xff]  ;;  %v698_v55 = vadd.f32 %v570_v44, %v442_v46  ;;  %v317_v58 = vld [vmem:[#allocation5 + $0x3f8] sm:$0xff] }
  0x8e   :  { %v572_v54 = vld [vmem:[#allocation7 + $0x3f0] sm:$0xff]  ;;  %824 = vst [vmem:[#allocation8 + $0x3d0] sm:$0xff] %v696_v45  ;;  %v444_v56 = vadd.f32 %v316_v53, %v188_v52  ;;  %v573_v59 = vld [vmem:[#allocation7 + $0x3f8] sm:$0xff]  ;;  %v699_v60 = vadd.f32 %v571_v49, %v443_v51  ;;  %v445_v61 = vadd.f32 %v317_v58, %v189_v57 }
  0x8f   :  { %825 = vst [vmem:[#allocation8 + $0x3d8] sm:$0xff] %v697_v50 }
  0x90   :  { %826 = vst [vmem:[#allocation8 + $0x3e0] sm:$0xff] %v698_v55  ;;  %v700_v62 = vadd.f32 %v572_v54, %v444_v56  ;;  %v701_v63 = vadd.f32 %v573_v59, %v445_v61 }
  0x91   :  { %827 = vst [vmem:[#allocation8 + $0x3e8] sm:$0xff] %v699_v60 }
  0x92   :  { %828 = vst [vmem:[#allocation8 + $0x3f0] sm:$0xff] %v700_v62 }
  0x93   :  { %829 = vst [vmem:[#allocation8 + $0x3f8] sm:$0xff] %v701_v63 }
  0x94   :  { %842 = dma.vmem_to_hbm [thread:$0]  %s835_s27, 16384, %s837_s30, [#allocation4], %s959_s20, %s959_s20, %s960_s21  }
  0x95   :  { %956 = dma.done.wait [#allocation4], 16384  }
  0x96   :  { %957 = vsyncadd [#allocation4], 4294950912 }
  0x97   :  { %847 = vsyncpa [#allocation3], 1 }
  0x98   :  { %848 = vsyncpa [#allocation6], 1 }
  0x99   :  { %849 = vsyncpa [#allocation4], 1 }

</bundles_post_ra>
